<compile_context>
chip_gen: v7x
topology: tpu7x:2x2x1
jax: 0.10.0
libtpu: 0.0.40
codegen_flags: <defaults>
</compile_context>

<pallas_src>
import math
from functools import partial

import jax
import jax.numpy as jnp
from jax.experimental import pallas as pl
from jax.experimental.pallas import tpu as pltpu

_LANES = 128


def _cdiv(a, b):
    return -(-a // b)


# ---------------------------------------------------------------------------
# kernel: fused squared-error partial reduction into an (8, 128) block
# ---------------------------------------------------------------------------
def _rmse_partial_kernel(yhat_ref, y_ref, out_ref, *, n_inner, num_tiles,
                         rem_rows, tile_m, guard_tail):
    c = pl.program_id(0)                 # "parallel" axis (TensorCore shard)
    k = pl.program_id(1)                 # "arbitrary" reduction axis
    g = c * n_inner + k                  # global row-tile index

    @pl.when(k == 0)
    def _init():
        out_ref[...] = jnp.zeros_like(out_ref)

    def _accumulate():
        # In-kernel upcast: stream native dtype from HBM, do f32 math.
        d = yhat_ref[...].astype(jnp.float32) - y_ref[...].astype(jnp.float32)

        if rem_rows != tile_m:           # static: last row tile is ragged
            row_id = jax.lax.broadcasted_iota(jnp.int32, (tile_m, _LANES), 0)
            keep = (row_id < rem_rows) | (g != num_tiles - 1)
            d = jnp.where(keep, d, 0.0)

        d2 = d * d
        if tile_m % 8 == 0:
            # (tile_m,128) -> (tile_m//8, 8, 128): sum over the leading vreg
            # axis is pure VPU vreg adds; one (8,128) add into the resident
            # output block.  No per-step sublane (XLU) reduction.
            out_ref[...] += jnp.sum(d2.reshape(tile_m // 8, 8, _LANES), axis=0)
        else:
            # tiny single-tile fallback (tile_m == rows < 8*k)
            out_ref[0:1, :] += jnp.sum(d2, axis=0, keepdims=True)

    if guard_tail:
        # grid was padded to a rectangle; skip duplicated (clamped) slots
        pl.when(g < num_tiles)(_accumulate)
    else:
        _accumulate()


# ---------------------------------------------------------------------------
# wrapper
# ---------------------------------------------------------------------------
@partial(jax.jit, static_argnames=("eps", "tile_m"))
def rmse_loss(yhat, y, eps=1e-6, tile_m=8192):
    """RMSELoss.forward: sqrt(MSE(yhat, y) + eps), returns a scalar."""
    assert yhat.shape == y.shape, "yhat and y must have the same shape"
    n = int(math.prod(yhat.shape))
    assert n > 0

    flat_yhat = yhat.reshape(-1)
    flat_y = y.reshape(-1)

    lane_rem = n % _LANES
    if lane_rem:
        # Slow path only for n % 128 != 0: pad both with zeros up to the next
        # lane multiple (zero contribution to the squared-diff sum).
        pad = _LANES - lane_rem
        flat_yhat = jnp.pad(flat_yhat, (0, pad))
        flat_y = jnp.pad(flat_y, (0, pad))
    rows = _cdiv(n, _LANES)

    yhat2d = flat_yhat.reshape(rows, _LANES)      # pure reshape when lane_rem==0
    y2d = flat_y.reshape(rows, _LANES)

    itemsize = jnp.dtype(yhat.dtype).itemsize
    # sublane multiple for min-tile: (8,128) f32, (16,128) bf16, (32,128) 8-bit
    sub_mult = max(8, 32 // max(itemsize, 1))

    if rows <= tile_m:
        tile_m_eff = rows                         # single block == full row extent
    else:
        tile_m_eff = max(sub_mult, (tile_m // sub_mult) * sub_mult)

    num_tiles = _cdiv(rows, tile_m_eff)
    rem_rows = rows - (num_tiles - 1) * tile_m_eff   # valid rows in last tile

    # Shard row tiles across both TensorCores on v7x; harmless on 1-TC chips.
    n_outer = 2 if num_tiles >= 4 else 1
    n_inner = _cdiv(num_tiles, n_outer)
    needs_clamp = (n_outer * n_inner != num_tiles)

    def row_map(c, k, n_inner=n_inner, last=num_tiles - 1, clamp=needs_clamp):
        g = c * n_inner + k
        if clamp:
            g = jnp.minimum(g, last)              # keep DMA in-bounds; kernel skips dup
        return (g, 0)

    kernel = partial(_rmse_partial_kernel, n_inner=n_inner, num_tiles=num_tiles,
                     rem_rows=rem_rows, tile_m=tile_m_eff, guard_tail=needs_clamp)

    partials = pl.pallas_call(
        kernel,
        out_shape=jax.ShapeDtypeStruct((n_outer * 8, _LANES), jnp.float32),
        grid=(n_outer, n_inner),
        in_specs=[
            pl.BlockSpec((tile_m_eff, _LANES), row_map),
            pl.BlockSpec((tile_m_eff, _LANES), row_map),
        ],
        out_specs=pl.BlockSpec((8, _LANES), lambda c, k: (c, 0)),
        compiler_params=pltpu.CompilerParams(
            dimension_semantics=("parallel", "arbitrary"),
            vmem_limit_bytes=32 * 1024 * 1024,
        ),
        cost_estimate=pl.CostEstimate(
            flops=3 * n,
            bytes_accessed=2 * n * itemsize + n_outer * 8 * _LANES * 4,
            transcendentals=0,
        ),
    )(yhat2d, y2d)

    # Tiny cross-core / cross-lane combine + sqrt (negligible jnp ops).
    mse = jnp.sum(partials) / n
    return jnp.sqrt(mse + eps)


# ---------------------------------------------------------------------------
if __name__ == "__main__":
    key = jax.random.PRNGKey(0)
    k1, k2, k3, k4 = jax.random.split(key, 4)
    eps = 1e-6

    # Test 1: fast path — n % 128 == 0, single tile, pure reshape (no copy).
    yhat = jax.random.normal(k1, (2, 4, 16, 16), jnp.float32)
    y = jax.random.normal(k2, (2, 4, 16, 16), jnp.float32)
    loss = jax.block_until_ready(rmse_loss(yhat, y, eps=eps))
    ref = jnp.sqrt(jnp.mean((yhat - y) ** 2) + eps)
    assert loss.shape == ()
    assert jnp.allclose(loss, ref, atol=1e-5, rtol=1e-5), (loss, ref)

    # Test 2: ragged path — n % 128 != 0, multi-tile 2-D grid (parallel outer
    # axis), in-kernel mask of the ragged last row tile, clamped index_map.
    yhat2 = jax.random.normal(k3, (3, 5, 37, 41), jnp.float32)
    y2 = jax.random.normal(k4, (3, 5, 37, 41), jnp.float32)
    loss2 = jax.block_until_ready(rmse_loss(yhat2, y2, eps=eps, tile_m=8))
    ref2 = jnp.sqrt(jnp.mean((yhat2 - y2) ** 2) + eps)
    assert jnp.allclose(loss2, ref2, atol=1e-5, rtol=1e-5), (loss2, ref2)

    # Test 3: bf16 inputs streamed at native width, upcast inside the kernel.
    yhat3 = yhat.astype(jnp.bfloat16)
    y3 = y.astype(jnp.bfloat16)
    loss3 = jax.block_until_ready(rmse_loss(yhat3, y3, eps=eps))
    ref3 = jnp.sqrt(jnp.mean((yhat3.astype(jnp.float32)
                              - y3.astype(jnp.float32)) ** 2) + eps)
    assert jnp.allclose(loss3, ref3, atol=1e-5, rtol=1e-5), (loss3, ref3)

    print("KERNEL_OK")
</pallas_src>

<mosaic_0001>
module attributes {stable_mosaic.version = 11 : i64} {
  func.func @_rmse_partial_kernel(%arg0: i32, %arg1: i32, %arg2: memref<16x128xf32, #tpu.memory_space<vmem>>, %arg3: memref<16x128xf32, #tpu.memory_space<vmem>>, %arg4: memref<8x128xf32, #tpu.memory_space<vmem>>) attributes {dimension_semantics = [#tpu.dimension_semantics<parallel>, #tpu.dimension_semantics<arbitrary>], iteration_bounds = array<i64: 1, 1>, scalar_prefetch = 0 : i64, scratch_operands = 0 : i64, tpu.core_type = #tpu.core_type<tc>, window_params = [{transform_indices = @transform_0, window_bounds = array<i64: 16, 128>}, {transform_indices = @transform_1, window_bounds = array<i64: 16, 128>}, {transform_indices = @transform_2, window_bounds = array<i64: 8, 128>}]} {
    %c0_i32 = arith.constant 0 : i32
    %0 = arith.cmpi eq, %arg1, %c0_i32 : i32
    %1 = arith.extui %0 : i1 to i32
    %c0_i32_0 = arith.constant 0 : i32
    %2 = arith.cmpi ne, %1, %c0_i32_0 : i32
    scf.if %2 {
      %cst_8 = arith.constant 0.000000e+00 : f32
      %12 = vector.broadcast %cst_8 : f32 to vector<8x128xf32>
      %c0_9 = arith.constant 0 : index
      %c0_10 = arith.constant 0 : index
      %13 = vector.load %arg4[%c0_9, %c0_10] : memref<8x128xf32, #tpu.memory_space<vmem>>, vector<8x128xf32>
      tpu.vector_store %arg4[%c0_9, %c0_10], %12 {strides = array<i32>} : memref<8x128xf32, #tpu.memory_space<vmem>>, vector<8x128xf32>,
    } else {
    }
    %c0 = arith.constant 0 : index
    %c0_1 = arith.constant 0 : index
    %3 = vector.load %arg2[%c0, %c0_1] : memref<16x128xf32, #tpu.memory_space<vmem>>, vector<16x128xf32>
    %c0_2 = arith.constant 0 : index
    %c0_3 = arith.constant 0 : index
    %4 = vector.load %arg3[%c0_2, %c0_3] : memref<16x128xf32, #tpu.memory_space<vmem>>, vector<16x128xf32>
    %5 = arith.subf %3, %4 : vector<16x128xf32>
    %6 = arith.mulf %5, %5 : vector<16x128xf32>
    %c0_4 = arith.constant 0 : index
    %c0_5 = arith.constant 0 : index
    %7 = vector.load %arg4[%c0_4, %c0_5] : memref<8x128xf32, #tpu.memory_space<vmem>>, vector<8x128xf32>
    %8 = vector.shape_cast %6 : vector<16x128xf32> to vector<2x8x128xf32>
    %cst = arith.constant dense<0.000000e+00> : vector<8x128xf32>
    %9 = vector.multi_reduction <add>, %8, %cst [0] : vector<2x8x128xf32> to vector<8x128xf32>
    %10 = arith.addf %7, %9 : vector<8x128xf32>
    %c0_6 = arith.constant 0 : index
    %c0_7 = arith.constant 0 : index
    %11 = vector.load %arg4[%c0_6, %c0_7] : memref<8x128xf32, #tpu.memory_space<vmem>>, vector<8x128xf32>
    tpu.vector_store %arg4[%c0_6, %c0_7], %10 {strides = array<i32>} : memref<8x128xf32, #tpu.memory_space<vmem>>, vector<8x128xf32>,
    return
  }
  func.func @transform_0(%arg0: i32, %arg1: i32) -> (i32, i32) {
    %c1_i32 = arith.constant 1 : i32
    %0 = arith.muli %arg0, %c1_i32 : i32
    %1 = arith.addi %0, %arg1 : i32
    %c0_i32 = arith.constant 0 : i32
    %c0_i32_0 = arith.constant 0 : i32
    return %1, %c0_i32 : i32, i32
  }
  func.func @transform_1(%arg0: i32, %arg1: i32) -> (i32, i32) {
    %c1_i32 = arith.constant 1 : i32
    %0 = arith.muli %arg0, %c1_i32 : i32
    %1 = arith.addi %0, %arg1 : i32
    %c0_i32 = arith.constant 0 : i32
    %c0_i32_0 = arith.constant 0 : i32
    return %1, %c0_i32 : i32, i32
  }
  func.func @transform_2(%arg0: i32, %arg1: i32) -> (i32, i32) {
    %c0_i32 = arith.constant 0 : i32
    %c0_i32_0 = arith.constant 0 : i32
    return %arg0, %c0_i32 : i32, i32
  }
}

</mosaic_0001>

<bundles_post_ra>
// kernel: rmse_loss.1
= control target key start
LH: loop header
LB: loop body
LE: loop exit
PB: predicated region body
PF: predicated region fallthrough
CT: control target
= control target key end

     0   :  { %s119_s0 = inlined_call_operand.vmem [shape: f32[16,128], index: 0, kind: input, shape index: {}]   ;;  %s120_s1 = inlined_call_operand.vmem [shape: f32[16,128], index: 1, kind: input, shape index: {}]   ;;  %s121_s2 = inlined_call_operand.vmem [shape: f32[8,128], index: 2, kind: output, shape index: {}]  }
   0x1   :  { %v60_v0 = vld [vmem:[%s119_s0] sm:$0xff]  ;;  %v61_v1 = vld [vmem:[%s119_s0 + $0x8] sm:$0xff] }
   0x2   :  { %v62_v2 = vld [vmem:[%s120_s1] sm:$0xff]  ;;  %v63_v3 = vld [vmem:[%s120_s1 + $0x8] sm:$0xff] }
   0x3   :  { %v64_v4 = vsub.f32 %v60_v0, %v62_v2  ;;  %v65_v5 = vsub.f32 %v61_v1, %v63_v3 }
   0x5   :  { %v66_v6 = vmul.f32 %v64_v4, %v64_v4  ;;  %v67_v7 = vmul.f32 %v65_v5, %v65_v5 }
   0x7   :  { %v69_v8 = vadd.f32 %v67_v7, %v66_v6 }
   0x9   :  { %71 = vst [vmem:[%s121_s2] sm:$0xff] %v69_v8 }

</bundles_post_ra>
